<compile_context>
chip_gen: v5e
topology: v5e:2x2
jax: 0.10.0
libtpu: 0.0.40
codegen_flags: <defaults>
</compile_context>

<pallas_src>
import jax
import jax.numpy as jnp
from jax.experimental import pallas as pl
from jax.experimental.pallas import tpu as pltpu


def _encoder_kernel(x_ref, w1_ref, b1_ref, w2_ref, b2_ref,
                    wh_ref, bh_ref, eps_ref, z_ref, h_ref):
    negslope = 0.2
    latent = z_ref.shape[-1]

    # Linear(seq_len, 512): bf16 MXU matmul, f32 accumulate, f32 bias + LeakyReLU
    h1 = jnp.dot(x_ref[...], w1_ref[...],
                 preferred_element_type=jnp.float32) + b1_ref[...]
    h1 = jnp.where(h1 >= 0, h1, negslope * h1)

    # Linear(512, 512) + LeakyReLU
    h2 = jnp.dot(h1.astype(jnp.bfloat16), w2_ref[...],
                 preferred_element_type=jnp.float32) + b2_ref[...]
    h2 = jnp.where(h2 >= 0, h2, negslope * h2)

    # Fused mu||std head: one (512, 2*latent) matmul instead of two narrow ones
    head = jnp.dot(h2.astype(jnp.bfloat16), wh_ref[...],
                   preferred_element_type=jnp.float32) + bh_ref[...]
    mu = head[:, :latent]
    sd = head[:, latent:]

    # reparameterization epilogue (f32): z = eps * std + mu
    z_ref[...] = eps_ref[...] * sd + mu
    h_ref[...] = h2


def _round_up(n, m):
    return ((n + m - 1) // m) * m


def encoder_forward(x, params, eps, max_batch_tile=256):
    """x: (B, seq_len) f32; eps: (B, latent) f32; params: dict of f32 arrays."""
    B, seq_len = x.shape
    hidden = params["w2"].shape[1]
    latent = params["wmu"].shape[1]

    # Fuse the two heads into one weight / bias (columnwise concat is exact).
    w_head = jnp.concatenate([params["wmu"], params["wsd"]], axis=1)
    b_head = jnp.concatenate([params["bmu"], params["bsd"]], axis=1)

    # bf16 matmul operands (accumulation stays f32 inside the kernel).
    x_bf = x.astype(jnp.bfloat16)
    w1 = params["w1"].astype(jnp.bfloat16)
    w2 = params["w2"].astype(jnp.bfloat16)
    w_head = w_head.astype(jnp.bfloat16)

    # Batch tile: multiple of 8 (sublane), capped so the per-step working set
    # stays far under v7x's 64 MiB VMEM even double-buffered.
    TB = min(max_batch_tile, _round_up(B, 8))
    B_pad = _round_up(B, TB)
    eps_p = eps
    if B_pad != B:
        x_bf = jnp.pad(x_bf, ((0, B_pad - B), (0, 0)))
        eps_p = jnp.pad(eps_p, ((0, B_pad - B), (0, 0)))
    grid = (B_pad // TB,)

    def batch_spec(cols):
        return pl.BlockSpec((TB, cols), lambda i: (i, 0))

    def const_spec(shape):
        return pl.BlockSpec(shape, lambda i: (0, 0))  # resident across tiles

    flops = 2 * B_pad * (seq_len * hidden + hidden * hidden + hidden * 2 * latent)
    bytes_accessed = (
        x_bf.size * 2 + eps_p.size * 4
        + w1.size * 2 + w2.size * 2 + w_head.size * 2
        + params["b1"].size * 4 + params["b2"].size * 4 + b_head.size * 4
        + B_pad * latent * 4 + B_pad * hidden * 4)

    z, h = pl.pallas_call(
        _encoder_kernel,
        out_shape=(
            jax.ShapeDtypeStruct((B_pad, latent), jnp.float32),
            jax.ShapeDtypeStruct((B_pad, hidden), jnp.float32),
        ),
        grid_spec=pltpu.PrefetchScalarGridSpec(
            num_scalar_prefetch=0,
            grid=grid,
            in_specs=[
                batch_spec(seq_len),                   # x tile
                const_spec((seq_len, hidden)),         # w1 (resident)
                const_spec((1, hidden)),               # b1
                const_spec((hidden, hidden)),          # w2 (resident)
                const_spec((1, hidden)),               # b2
                const_spec((hidden, 2 * latent)),      # fused head weight
                const_spec((1, 2 * latent)),           # fused head bias
                batch_spec(latent),                    # eps tile
            ],
            out_specs=[
                batch_spec(latent),                    # z tile
                batch_spec(hidden),                    # h tile
            ],
        ),
        compiler_params=pltpu.CompilerParams(
            dimension_semantics=("parallel",)),
        cost_estimate=pl.CostEstimate(
            flops=flops, transcendentals=0, bytes_accessed=bytes_accessed),
    )(x_bf, w1, params["b1"], w2, params["b2"], w_head, b_head, eps_p)

    if B_pad != B:
        z, h = z[:B], h[:B]
    return z, h


def init_params(key, seq_len, hidden, latent):
    """Deterministic synthetic init (uniform, PyTorch-Linear-style bounds)."""
    ks = jax.random.split(key, 8)

    def lin(kw, kb, fan_in, fan_out):
        bound = 1.0 / jnp.sqrt(fan_in)
        w = jax.random.uniform(kw, (fan_in, fan_out), jnp.float32, -bound, bound)
        b = jax.random.uniform(kb, (1, fan_out), jnp.float32, -bound, bound)
        return w, b

    w1, b1 = lin(ks[0], ks[1], seq_len, hidden)
    w2, b2 = lin(ks[2], ks[3], hidden, hidden)
    wmu, bmu = lin(ks[4], ks[5], hidden, latent)
    wsd, bsd = lin(ks[6], ks[7], hidden, latent)
    return dict(w1=w1, b1=b1, w2=w2, b2=b2,
                wmu=wmu, bmu=bmu, wsd=wsd, bsd=bsd)


def reference_forward(x, p, eps, mm_dtype=jnp.float32):
    """Plain-JAX reference; mm_dtype lets us match the kernel's bf16 matmuls."""
    def mm(a, w):
        return jnp.dot(a.astype(mm_dtype), w.astype(mm_dtype),
                       preferred_element_type=jnp.float32)
    lrelu = lambda t: jnp.where(t >= 0, t, 0.2 * t)
    h = lrelu(mm(x, p["w1"]) + p["b1"])
    h = lrelu(mm(h, p["w2"]) + p["b2"])
    mu = mm(h, p["wmu"]) + p["bmu"]
    sd = mm(h, p["wsd"]) + p["bsd"]
    return eps * sd + mu, h


if __name__ == "__main__":
    # Small shapes consistent with the module: opt.seq_len=8, opt.latent_size=32
    B, SEQ_LEN, HIDDEN, LATENT = 8, 8, 512, 32

    key = jax.random.PRNGKey(0)
    k_x, k_eps, k_p = jax.random.split(key, 3)

    x = jax.random.normal(k_x, (B, SEQ_LEN), jnp.float32)
    eps = jax.random.normal(k_eps, (B, LATENT), jnp.float32)  # torch.randn noise
    params = init_params(k_p, SEQ_LEN, HIDDEN, LATENT)

    z, h = encoder_forward(x, params, eps)
    jax.block_until_ready((z, h))
    assert z.shape == (B, LATENT) and h.shape == (B, HIDDEN)

    # Exact-path check: reference using the same bf16-operand / f32-accum matmuls
    z_bf, h_bf = reference_forward(x, params, eps, mm_dtype=jnp.bfloat16)
    assert jnp.allclose(z, z_bf, atol=1e-3, rtol=1e-3)
    assert jnp.allclose(h, h_bf, atol=1e-3, rtol=1e-3)

    # Loose check against the pure-f32 reference (bf16 matmul rounding)
    z_f32, h_f32 = reference_forward(x, params, eps, mm_dtype=jnp.float32)
    assert jnp.allclose(z, z_f32, atol=5e-2, rtol=5e-2)
    assert jnp.allclose(h, h_f32, atol=5e-2, rtol=5e-2)

    print("KERNEL_OK")
</pallas_src>

<mosaic_0001>
module attributes {stable_mosaic.version = 11 : i64} {
  func.func @_encoder_kernel(%arg0: i32, %arg1: memref<8x8xbf16, #tpu.memory_space<vmem>>, %arg2: memref<8x512xbf16, #tpu.memory_space<vmem>>, %arg3: memref<1x512xf32, #tpu.memory_space<vmem>>, %arg4: memref<512x512xbf16, #tpu.memory_space<vmem>>, %arg5: memref<1x512xf32, #tpu.memory_space<vmem>>, %arg6: memref<512x64xbf16, #tpu.memory_space<vmem>>, %arg7: memref<1x64xf32, #tpu.memory_space<vmem>>, %arg8: memref<8x32xf32, #tpu.memory_space<vmem>>, %arg9: memref<8x32xf32, #tpu.memory_space<vmem>>, %arg10: memref<8x512xf32, #tpu.memory_space<vmem>>) attributes {dimension_semantics = [#tpu.dimension_semantics<parallel>], iteration_bounds = array<i64: 1>, scalar_prefetch = 0 : i64, scratch_operands = 0 : i64, tpu.core_type = #tpu.core_type<tc>, window_params = [{transform_indices = @transform_0, window_bounds = array<i64: 8, 8>}, {pipeline_mode = #tpu.pipeline_mode<synchronous>, transform_indices = @transform_1, window_bounds = array<i64: 8, 512>}, {pipeline_mode = #tpu.pipeline_mode<synchronous>, transform_indices = @transform_2, window_bounds = array<i64: 1, 512>}, {pipeline_mode = #tpu.pipeline_mode<synchronous>, transform_indices = @transform_3, window_bounds = array<i64: 512, 512>}, {pipeline_mode = #tpu.pipeline_mode<synchronous>, transform_indices = @transform_4, window_bounds = array<i64: 1, 512>}, {pipeline_mode = #tpu.pipeline_mode<synchronous>, transform_indices = @transform_5, window_bounds = array<i64: 512, 64>}, {pipeline_mode = #tpu.pipeline_mode<synchronous>, transform_indices = @transform_6, window_bounds = array<i64: 1, 64>}, {transform_indices = @transform_7, window_bounds = array<i64: 8, 32>}, {transform_indices = @transform_8, window_bounds = array<i64: 8, 32>}, {transform_indices = @transform_9, window_bounds = array<i64: 8, 512>}]} {
    %c0 = arith.constant 0 : index
    %c0_0 = arith.constant 0 : index
    %0 = vector.load %arg1[%c0, %c0_0] : memref<8x8xbf16, #tpu.memory_space<vmem>>, vector<8x8xbf16>
    %c0_1 = arith.constant 0 : index
    %c0_2 = arith.constant 0 : index
    %1 = vector.load %arg2[%c0_1, %c0_2] : memref<8x512xbf16, #tpu.memory_space<vmem>>, vector<8x512xbf16>
    %cst = arith.constant dense<0.000000e+00> : vector<8x512xf32>
    %2 = tpu.matmul %0, %1, %cst {dimension_numbers = #tpu.dot_dimension_numbers<[1], [0], [0], [1], [0, 0, 1, 1], [], []>} : vector<8x8xbf16>, vector<8x512xbf16>, vector<8x512xf32> -> vector<8x512xf32>
    %c0_3 = arith.constant 0 : index
    %c0_4 = arith.constant 0 : index
    %3 = vector.load %arg3[%c0_3, %c0_4] : memref<1x512xf32, #tpu.memory_space<vmem>>, vector<1x512xf32>
    %4 = vector.broadcast %3 : vector<1x512xf32> to vector<8x512xf32>
    %5 = arith.addf %2, %4 : vector<8x512xf32>
    %cst_5 = arith.constant 0.000000e+00 : f32
    %6 = vector.broadcast %cst_5 : f32 to vector<8x512xf32>
    %7 = arith.cmpf oge, %5, %6 : vector<8x512xf32>
    %cst_6 = arith.constant 2.000000e-01 : f32
    %8 = vector.broadcast %cst_6 : f32 to vector<8x512xf32>
    %9 = arith.mulf %8, %5 : vector<8x512xf32>
    %10 = arith.select %7, %5, %9 : vector<8x512xi1>, vector<8x512xf32>
    %11 = arith.truncf %10 : vector<8x512xf32> to vector<8x512xbf16>
    %c0_7 = arith.constant 0 : index
    %c0_8 = arith.constant 0 : index
    %12 = vector.load %arg4[%c0_7, %c0_8] : memref<512x512xbf16, #tpu.memory_space<vmem>>, vector<512x512xbf16>
    %cst_9 = arith.constant dense<0.000000e+00> : vector<8x512xf32>
    %13 = tpu.matmul %11, %12, %cst_9 {dimension_numbers = #tpu.dot_dimension_numbers<[1], [0], [0], [1], [0, 0, 1, 1], [], []>} : vector<8x512xbf16>, vector<512x512xbf16>, vector<8x512xf32> -> vector<8x512xf32>
    %c0_10 = arith.constant 0 : index
    %c0_11 = arith.constant 0 : index
    %14 = vector.load %arg5[%c0_10, %c0_11] : memref<1x512xf32, #tpu.memory_space<vmem>>, vector<1x512xf32>
    %15 = vector.broadcast %14 : vector<1x512xf32> to vector<8x512xf32>
    %16 = arith.addf %13, %15 : vector<8x512xf32>
    %cst_12 = arith.constant 0.000000e+00 : f32
    %17 = vector.broadcast %cst_12 : f32 to vector<8x512xf32>
    %18 = arith.cmpf oge, %16, %17 : vector<8x512xf32>
    %cst_13 = arith.constant 2.000000e-01 : f32
    %19 = vector.broadcast %cst_13 : f32 to vector<8x512xf32>
    %20 = arith.mulf %19, %16 : vector<8x512xf32>
    %21 = arith.select %18, %16, %20 : vector<8x512xi1>, vector<8x512xf32>
    %22 = arith.truncf %21 : vector<8x512xf32> to vector<8x512xbf16>
    %c0_14 = arith.constant 0 : index
    %c0_15 = arith.constant 0 : index
    %23 = vector.load %arg6[%c0_14, %c0_15] : memref<512x64xbf16, #tpu.memory_space<vmem>>, vector<512x64xbf16>
    %cst_16 = arith.constant dense<0.000000e+00> : vector<8x64xf32>
    %24 = tpu.matmul %22, %23, %cst_16 {dimension_numbers = #tpu.dot_dimension_numbers<[1], [0], [0], [1], [0, 0, 1, 1], [], []>} : vector<8x512xbf16>, vector<512x64xbf16>, vector<8x64xf32> -> vector<8x64xf32>
    %c0_17 = arith.constant 0 : index
    %c0_18 = arith.constant 0 : index
    %25 = vector.load %arg7[%c0_17, %c0_18] : memref<1x64xf32, #tpu.memory_space<vmem>>, vector<1x64xf32>
    %26 = vector.broadcast %25 : vector<1x64xf32> to vector<8x64xf32>
    %27 = arith.addf %24, %26 : vector<8x64xf32>
    %28 = vector.extract_strided_slice %27 {offsets = [0, 0], sizes = [8, 32], strides = [1, 1]} : vector<8x64xf32> to vector<8x32xf32>
    %29 = vector.extract_strided_slice %27 {offsets = [0, 32], sizes = [8, 32], strides = [1, 1]} : vector<8x64xf32> to vector<8x32xf32>
    %c0_19 = arith.constant 0 : index
    %c0_20 = arith.constant 0 : index
    %30 = vector.load %arg8[%c0_19, %c0_20] : memref<8x32xf32, #tpu.memory_space<vmem>>, vector<8x32xf32>
    %31 = arith.mulf %30, %29 : vector<8x32xf32>
    %32 = arith.addf %31, %28 : vector<8x32xf32>
    %c0_21 = arith.constant 0 : index
    %c0_22 = arith.constant 0 : index
    %33 = vector.load %arg9[%c0_21, %c0_22] : memref<8x32xf32, #tpu.memory_space<vmem>>, vector<8x32xf32>
    tpu.vector_store %arg9[%c0_21, %c0_22], %32 {strides = array<i32>} : memref<8x32xf32, #tpu.memory_space<vmem>>, vector<8x32xf32>,
    %c0_23 = arith.constant 0 : index
    %c0_24 = arith.constant 0 : index
    %34 = vector.load %arg10[%c0_23, %c0_24] : memref<8x512xf32, #tpu.memory_space<vmem>>, vector<8x512xf32>
    tpu.vector_store %arg10[%c0_23, %c0_24], %21 {strides = array<i32>} : memref<8x512xf32, #tpu.memory_space<vmem>>, vector<8x512xf32>,
    return
  }
  func.func @transform_0(%arg0: i32) -> (i32, i32) {
    %c0_i32 = arith.constant 0 : i32
    %c0_i32_0 = arith.constant 0 : i32
    return %arg0, %c0_i32 : i32, i32
  }
  func.func @transform_1(%arg0: i32) -> (i32, i32) {
    %c0_i32 = arith.constant 0 : i32
    %c0_i32_0 = arith.constant 0 : i32
    %c0_i32_1 = arith.constant 0 : i32
    return %c0_i32, %c0_i32_0 : i32, i32
  }
  func.func @transform_2(%arg0: i32) -> (i32, i32) {
    %c0_i32 = arith.constant 0 : i32
    %c0_i32_0 = arith.constant 0 : i32
    %c0_i32_1 = arith.constant 0 : i32
    return %c0_i32, %c0_i32_0 : i32, i32
  }
  func.func @transform_3(%arg0: i32) -> (i32, i32) {
    %c0_i32 = arith.constant 0 : i32
    %c0_i32_0 = arith.constant 0 : i32
    %c0_i32_1 = arith.constant 0 : i32
    return %c0_i32, %c0_i32_0 : i32, i32
  }
  func.func @transform_4(%arg0: i32) -> (i32, i32) {
    %c0_i32 = arith.constant 0 : i32
    %c0_i32_0 = arith.constant 0 : i32
    %c0_i32_1 = arith.constant 0 : i32
    return %c0_i32, %c0_i32_0 : i32, i32
  }
  func.func @transform_5(%arg0: i32) -> (i32, i32) {
    %c0_i32 = arith.constant 0 : i32
    %c0_i32_0 = arith.constant 0 : i32
    %c0_i32_1 = arith.constant 0 : i32
    return %c0_i32, %c0_i32_0 : i32, i32
  }
  func.func @transform_6(%arg0: i32) -> (i32, i32) {
    %c0_i32 = arith.constant 0 : i32
    %c0_i32_0 = arith.constant 0 : i32
    %c0_i32_1 = arith.constant 0 : i32
    return %c0_i32, %c0_i32_0 : i32, i32
  }
  func.func @transform_7(%arg0: i32) -> (i32, i32) {
    %c0_i32 = arith.constant 0 : i32
    %c0_i32_0 = arith.constant 0 : i32
    return %arg0, %c0_i32 : i32, i32
  }
  func.func @transform_8(%arg0: i32) -> (i32, i32) {
    %c0_i32 = arith.constant 0 : i32
    %c0_i32_0 = arith.constant 0 : i32
    return %arg0, %c0_i32 : i32, i32
  }
  func.func @transform_9(%arg0: i32) -> (i32, i32) {
    %c0_i32 = arith.constant 0 : i32
    %c0_i32_0 = arith.constant 0 : i32
    return %arg0, %c0_i32 : i32, i32
  }
}

</mosaic_0001>

<bundles_post_ra>
// kernel: tpu_custom_call.1
= control target key start
LH: loop header
LB: loop body
LE: loop exit
PB: predicated region body
PF: predicated region fallthrough
CT: control target
= control target key end

     0   :  { %15 = vsyncpa [#allocation3], 0  ;;  %s2627_s0 = inlined_call_operand.vmem [shape: bf16[8,8], index: 0, kind: input, shape index: {}]   ;;  %s2628_s1 = inlined_call_operand.vmem [shape: bf16[8,512], index: 1, kind: input, shape index: {}]   ;;  %s2629_s2 = inlined_call_operand.vmem [shape: f32[1,512], index: 2, kind: input, shape index: {}]   ;;  %s2630_s3 = inlined_call_operand.hbm [shape: bf16[512,512], index: 3, kind: input, shape index: {}]   ;;  %s2631_s4 = inlined_call_operand.vmem [shape: f32[1,512], index: 4, kind: input, shape index: {}]   ;;  %s2632_s5 = inlined_call_operand.vmem [shape: bf16[512,64], index: 5, kind: input, shape index: {}]   ;;  %s2633_s6 = inlined_call_operand.vmem [shape: f32[1,64], index: 6, kind: input, shape index: {}]   ;;  %s2634_s7 = inlined_call_operand.vmem [shape: f32[8,32], index: 7, kind: input, shape index: {}]   ;;  %s2635_s8 = inlined_call_operand.hbm [shape: f32[8,32], index: 8, kind: output, shape index: {0}]   ;;  %s2636_s9 = inlined_call_operand.hbm [shape: f32[8,512], index: 9, kind: output, shape index: {1}]  }
   0x1   :  { %16 = vsyncpa [#allocation4], 0 }
   0x2   :  { %17 = vsyncpa [#allocation7], 0  ;;  %s28_s11 = sshll.u32 %s2630_s3, 4  ;;  %s2407_s12 = smov [#allocation2]   ;;  %s29_s11 = int_to_ptr.hbm [resolvable:$true] %s28_s11 }
   0x3   :  { %s30_s13 = sshll.u32 %s2407_s12, 4  ;;  %s2408_s14 = smov 256   ;;  %s31_s13 = int_to_ptr.vmem [resolvable:$true] %s30_s13 }
   0x4   :  { %s2409_s15 = smov 16  }
   0x5   :  { %36 = dma.hbm_to_vmem [thread:$0]  %s29_s11, 16384, %s31_s13, [#allocation3], %s2408_s14, %s2408_s14, %s2409_s15  }
   0x6   :  { %2401 = dma.done.wait [#allocation3], 16384  }
   0x7   :  { %2402 = vsyncadd [#allocation3], 4294950912  ;;  %v51_v0 = vld [vmem:[%s2628_s1] sm:$0xff]  ;;  %v52_v1 = vld [vmem:[%s2628_s1 + $0x8] sm:$0xff]  ;;  %vm77_vm0 = vcmask 1043456   ;;  %vm73_vm1 = vcmask 64512  }
   0x8   :  { %v65_v2 = vunpack.c.l.b16 %v51_v0  ;;  %v66_v3 = vunpack.c.h.b16 %v51_v0  ;;  %v67_v4 = vunpack.c.l.b16 %v52_v1  ;;  %v68_v5 = vunpack.c.h.b16 %v52_v1  ;;  %v1636_v6 = vld [vmem:[#allocation2 + $0xe0] sm:$0xf]  ;;  %v2192_v7 = vld [vmem:[#allocation2 + $0xec] sm:$0xf0]  ;;  %s2410_s15 = smov [#allocation6]   ;;  %s1503_s18 = sshll.u32 %s2636_s9, 4  ;;  %s1504_s18 = int_to_ptr.hbm [resolvable:$true] %s1503_s18 }
   0x9   :  { %v1764_v8 = vld [vmem:[#allocation2 + $0x1e0] sm:$0xf]  ;;  %v2224_v9 = vld [vmem:[#allocation2 + $0x1ec] sm:$0xf0]  ;;  %v1637_v18 = vor.u32 %v2192_v7, %v1636_v6  ;;  %s1501_s16 = sshll.u32 %s2410_s15, 4  ;;  %s2411_s19 = smov 96   ;;  %s1502_s16 = int_to_ptr.vmem [resolvable:$true] %s1501_s16 }
   0xa   :  { %v69_v10 = vpack.c.b16 %v65_v2, %v65_v2  ;;  %v70_v11 = vpack.c.b16 %v66_v3, %v66_v3  ;;  %v71_v12 = vpack.c.b16 %v67_v4, %v67_v4  ;;  %v72_v13 = vpack.c.b16 %v68_v5, %v68_v5  ;;  %v1620_v14 = vld [vmem:[#allocation2 + $0xc0] sm:$0xf]  ;;  %v2188_v15 = vld [vmem:[#allocation2 + $0xcc] sm:$0xf0]  ;;  %s1492_s9 = sshll.u32 %s2635_s8, 4  ;;  %s1493_s9 = int_to_ptr.hbm [resolvable:$true] %s1492_s9 }
   0xb   :  { %v1748_v16 = vld [vmem:[#allocation2 + $0x1c0] sm:$0xf]  ;;  %v1765_v19 = vor.u32 %v2224_v9, %v1764_v8  ;;  %v2256_v20 = vld [vmem:[#allocation2 + $0x2ec] sm:$0xf0]  ;;  %v1621_v33 = vor.u32 %v2188_v15, %v1620_v14  ;;  %vm1479_vm10 = vcmask 261120  }
   0xc   :  { %v1892_v17 = vld [vmem:[#allocation2 + $0x2e0] sm:$0xf]  ;;  %v2288_v22 = vld [vmem:[#allocation2 + $0x3ec] sm:$0xf0]  ;;  %v79_v23 = vsel %vm77_vm0, %v69_v10, 0  ;;  %v82_v24 = vsel %vm77_vm0, %v70_v11, 0 }
   0xd   :  { %v2020_v21 = vld [vmem:[#allocation2 + $0x3e0] sm:$0xf]  ;;  %v85_v25 = vsel %vm77_vm0, %v71_v12, 0  ;;  %v88_v26 = vsel %vm77_vm0, %v72_v13, 0  ;;  %v2220_v27 = vld [vmem:[#allocation2 + $0x1cc] sm:$0xf0]  ;;  %97 = vmatpush.bf16.msra.mxu0 %v79_v23  ;;  %110 = vmatpush.bf16.msra.mxu1 %v82_v24  ;;  %v1893_v29 = vor.u32 %v2256_v20, %v1892_v17 }
   0xe   :  { %v50_v28 = vld [vmem:[%s2627_s0] sm:$0xf]  ;;  %123 = vmatpush.bf16.msra.mxu2 %v85_v25  ;;  %136 = vmatpush.bf16.msra.mxu3 %v88_v26  ;;  %v2021_v30 = vor.u32 %v2288_v22, %v2020_v21  ;;  %v1749_v34 = vor.u32 %v2220_v27, %v1748_v16  ;;  %v2252_v35 = vld [vmem:[#allocation2 + $0x2cc] sm:$0xf0] }
   0xf   :  { %v1604_v31 = vld [vmem:[#allocation2 + $0xa0] sm:$0xf]  ;;  %v2284_v37 = vld [vmem:[#allocation2 + $0x3cc] sm:$0xf0] }
  0x10   :  { %v1876_v32 = vld [vmem:[#allocation2 + $0x2c0] sm:$0xf]  ;;  %1518 = vmatmul.msk.bf16.vlgmr.msra.gmra.mxu0 %vm73_vm1, %v50_v28  ;;  %1519 = vmatmul.msk.bf16.vlgmr.msra.gmra.mxu1 %vm73_vm1, %v50_v28  ;;  %v2184_v38 = vld [vmem:[#allocation2 + $0xac] sm:$0xf0] }
  0x11   :  { %936 = vmatpush.bf16.msrb.mxu0 %v1637_v18  ;;  %949 = vmatpush.bf16.msrb.mxu1 %v1765_v19  ;;  %v2004_v36 = vld [vmem:[#allocation2 + $0x3c0] sm:$0xf]  ;;  %v2216_v40 = vld [vmem:[#allocation2 + $0x1ac] sm:$0xf0]  ;;  %v1877_v41 = vor.u32 %v2252_v35, %v1876_v32  ;;  %v1605_v45 = vor.u32 %v2184_v38, %v1604_v31  ;;  %v1638_v38 = vld [vmem:[#allocation2 + $0xf0] sm:$0xf0] }
  0x12   :  { %v1732_v39 = vld [vmem:[#allocation2 + $0x1a0] sm:$0xf]  ;;  %1520 = vmatmul.msk.bf16.vlgmr.msra.gmra.mxu2 %vm73_vm1, %v50_v28  ;;  %1521 = vmatmul.msk.bf16.vlgmr.msra.gmra.mxu3 %vm73_vm1, %v50_v28  ;;  %v2005_v42 = vor.u32 %v2284_v37, %v2004_v36  ;;  %v2248_v47 = vld [vmem:[#allocation2 + $0x2ac] sm:$0xf0]  ;;  %v2190_v37 = vld [vmem:[#allocation2 + $0xe4] sm:$0xf] }
  0x13   :  { %962 = vmatpush.bf16.msrb.mxu2 %v1893_v29  ;;  %975 = vmatpush.bf16.msrb.mxu3 %v2021_v30  ;;  %v1588_v43 = vld [vmem:[#allocation2 + $0x80] sm:$0xf]  ;;  %v1733_v46 = vor.u32 %v2216_v40, %v1732_v39  ;;  %v2280_v49 = vld [vmem:[#allocation2 + $0x3ac] sm:$0xf0]  ;;  %v2222_v39 = vld [vmem:[#allocation2 + $0x1e4] sm:$0xf] }
  0x14   :  { %v1860_v44 = vld [vmem:[#allocation2 + $0x2a0] sm:$0xf]  ;;  %v2180_v50 = vld [vmem:[#allocation2 + $0x8c] sm:$0xf0]  ;;  %v1766_v40 = vld [vmem:[#allocation2 + $0x1f0] sm:$0xf0] }
  0x15   :  { %937 = vmatpush.bf16.msrb.mxu0 %v1621_v33  ;;  %950 = vmatpush.bf16.msrb.mxu1 %v1749_v34  ;;  %v1988_v48 = vld [vmem:[#allocation2 + $0x3a0] sm:$0xf]  ;;  %v2212_v52 = vld [vmem:[#allocation2 + $0x18c] sm:$0xf0]  ;;  %v1861_v53 = vor.u32 %v2248_v47, %v1860_v44  ;;  %v1589_v57 = vor.u32 %v2180_v50, %v1588_v43  ;;  %v2186_v47 = vld [vmem:[#allocation2 + $0xc4] sm:$0xf] }
  0x16   :  { %v1716_v51 = vld [vmem:[#allocation2 + $0x180] sm:$0xf]  ;;  %v1989_v54 = vor.u32 %v2280_v49, %v1988_v48  ;;  %v2244_v59 = vld [vmem:[#allocation2 + $0x28c] sm:$0xf0]  ;;  %v2254_v50 = vld [vmem:[#allocation2 + $0x2e4] sm:$0xf] }
  0x17   :  { %963 = vmatpush.bf16.msrb.mxu2 %v1877_v41  ;;  %976 = vmatpush.bf16.msrb.mxu3 %v2005_v42  ;;  %v1572_v55 = vld [vmem:[#allocation2 + $0x60] sm:$0xf]  ;;  %v1717_v58 = vor.u32 %v2212_v52, %v1716_v51  ;;  %v2276_v61 = vld [vmem:[#allocation2 + $0x38c] sm:$0xf0]  ;;  %v1641_v51 = vor.u32 %v2190_v37, %v1638_v38  ;;  %v1769_v52 = vor.u32 %v2222_v39, %v1766_v40  ;;  %v2170_v37 = vld [vmem:[#allocation2 + $0x44] sm:$0xf] }
  0x18   :  { %v1844_v56 = vld [vmem:[#allocation2 + $0x280] sm:$0xf]  ;;  %v2176_v62 = vld [vmem:[#allocation2 + $0x6c] sm:$0xf0]  ;;  %v1558_v38 = vld [vmem:[#allocation2 + $0x50] sm:$0xf0] }
  0x19   :  { %938 = vmatpush.bf16.msrb.mxu0 %v1605_v45  ;;  %951 = vmatpush.bf16.msrb.mxu1 %v1733_v46  ;;  %v1972_v60 = vld [vmem:[#allocation2 + $0x380] sm:$0xf]  ;;  %v2208_v0 = vld [vmem:[#allocation2 + $0x16c] sm:$0xf0]  ;;  %v1845_v1 = vor.u32 %v2244_v59, %v1844_v56  ;;  %v1573_v5 = vor.u32 %v2176_v62, %v1572_v55  ;;  %v2022_v55 = vld [vmem:[#allocation2 + $0x3f0] sm:$0xf0] }
  0x1a   :  { %v1700_v63 = vld [vmem:[#allocation2 + $0x160] sm:$0xf]  ;;  %v1973_v2 = vor.u32 %v2276_v61, %v1972_v60  ;;  %v2240_v7 = vld [vmem:[#allocation2 + $0x26c] sm:$0xf0]  ;;  %v1622_v56 = vld [vmem:[#allocation2 + $0xd0] sm:$0xf0] }
  0x1b   :  { %964 = vmatpush.bf16.msrb.mxu2 %v1861_v53  ;;  %977 = vmatpush.bf16.msrb.mxu3 %v1989_v54  ;;  %v1556_v3 = vld [vmem:[#allocation2 + $0x40] sm:$0xf]  ;;  %v1701_v6 = vor.u32 %v2208_v0, %v1700_v63  ;;  %v2272_v9 = vld [vmem:[#allocation2 + $0x36c] sm:$0xf0]  ;;  %v1894_v53 = vld [vmem:[#allocation2 + $0x2f0] sm:$0xf0] }
  0x1c   :  { %v1828_v4 = vld [vmem:[#allocation2 + $0x260] sm:$0xf]  ;;  %v2172_v10 = vld [vmem:[#allocation2 + $0x4c] sm:$0xf0]  ;;  %v2286_v54 = vld [vmem:[#allocation2 + $0x3e4] sm:$0xf]  ;;  %v1897_v61 = vor.u32 %v2254_v50, %v1894_v53 }
  0x1d   :  { %939 = vmatpush.bf16.msrb.mxu0 %v1589_v57  ;;  %952 = vmatpush.bf16.msrb.mxu1 %v1717_v58  ;;  %v1956_v8 = vld [vmem:[#allocation2 + $0x360] sm:$0xf]  ;;  %v2204_v12 = vld [vmem:[#allocation2 + $0x14c] sm:$0xf0]  ;;  %v1829_v13 = vor.u32 %v2240_v7, %v1828_v4  ;;  %v1557_v17 = vor.u32 %v2172_v10, %v1556_v3  ;;  %v2218_v57 = vld [vmem:[#allocation2 + $0x1c4] sm:$0xf]  ;;  %v2025_v62 = vor.u32 %v2286_v54, %v2022_v55 }
  0x1e   :  { %v1684_v11 = vld [vmem:[#allocation2 + $0x140] sm:$0xf]  ;;  %v1957_v14 = vor.u32 %v2272_v9, %v1956_v8  ;;  %v2236_v19 = vld [vmem:[#allocation2 + $0x24c] sm:$0xf0]  ;;  %v1750_v58 = vld [vmem:[#allocation2 + $0x1d0] sm:$0xf0] }
  0x1f   :  { %965 = vmatpush.bf16.msrb.mxu2 %v1845_v1  ;;  %978 = vmatpush.bf16.msrb.mxu3 %v1973_v2  ;;  %v1540_v15 = vld [vmem:[#allocation2 + $0x20] sm:$0xf]  ;;  %v1685_v18 = vor.u32 %v2204_v12, %v1684_v11  ;;  %v2268_v21 = vld [vmem:[#allocation2 + $0x34c] sm:$0xf0]  ;;  %v2182_v63 = vld [vmem:[#allocation2 + $0xa4] sm:$0xf]  ;;  %v1625_v1 = vor.u32 %v2186_v47, %v1622_v56  ;;  %v1753_v2 = vor.u32 %v2218_v57, %v1750_v58 }
  0x20   :  { %v1812_v16 = vld [vmem:[#allocation2 + $0x240] sm:$0xf]  ;;  %v2168_v22 = vld [vmem:[#allocation2 + $0x2c] sm:$0xf0]  ;;  %v2250_v0 = vld [vmem:[#allocation2 + $0x2c4] sm:$0xf] }
  0x21   :  { %940 = vmatpush.bf16.msrb.mxu0 %v1573_v5  ;;  %953 = vmatpush.bf16.msrb.mxu1 %v1701_v6  ;;  %v1940_v20 = vld [vmem:[#allocation2 + $0x340] sm:$0xf]  ;;  %v2200_v24 = vld [vmem:[#allocation2 + $0x12c] sm:$0xf0]  ;;  %v1813_v25 = vor.u32 %v2236_v19, %v1812_v16  ;;  %v1541_v30 = vor.u32 %v2168_v22, %v1540_v15  ;;  %v1878_v3 = vld [vmem:[#allocation2 + $0x2d0] sm:$0xf0] }
  0x22   :  { %v1668_v23 = vld [vmem:[#allocation2 + $0x120] sm:$0xf]  ;;  %v1941_v26 = vor.u32 %v2268_v21, %v1940_v20  ;;  %v2164_v28 = vld [vmem:[#allocation2 + $0xc] sm:$0xf0]  ;;  %v2282_v4 = vld [vmem:[#allocation2 + $0x3c4] sm:$0xf]  ;;  %v1881_v9 = vor.u32 %v2250_v0, %v1878_v3 }
  0x23   :  { %966 = vmatpush.bf16.msrb.mxu2 %v1829_v13  ;;  %979 = vmatpush.bf16.msrb.mxu3 %v1957_v14  ;;  %v1524_v27 = vld [vmem:[#allocation2] sm:$0xf]  ;;  %v1669_v31 = vor.u32 %v2200_v24, %v1668_v23  ;;  %v2232_v32 = vld [vmem:[#allocation2 + $0x22c] sm:$0xf0]  ;;  %v2006_v5 = vld [vmem:[#allocation2 + $0x3d0] sm:$0xf0] }
  0x24   :  { %v1796_v29 = vld [vmem:[#allocation2 + $0x220] sm:$0xf]  ;;  %v2264_v34 = vld [vmem:[#allocation2 + $0x32c] sm:$0xf0]  ;;  %v1525_v45 = vor.u32 %v2164_v28, %v1524_v27  ;;  %v1606_v6 = vld [vmem:[#allocation2 + $0xb0] sm:$0xf0]  ;;  %v2009_v10 = vor.u32 %v2282_v4, %v2006_v5 }
  0x25   :  { %941 = vmatpush.bf16.msrb.mxu0 %v1557_v17  ;;  %954 = vmatpush.bf16.msrb.mxu1 %v1685_v18  ;;  %v1924_v33 = vld [vmem:[#allocation2 + $0x320] sm:$0xf]  ;;  %v2196_v36 = vld [vmem:[#allocation2 + $0x10c] sm:$0xf0]  ;;  %v1797_v41 = vor.u32 %v2232_v32, %v1796_v29  ;;  %v2214_v7 = vld [vmem:[#allocation2 + $0x1a4] sm:$0xf]  ;;  %v1609_v13 = vor.u32 %v2182_v63, %v1606_v6 }
  0x26   :  { %v1652_v35 = vld [vmem:[#allocation2 + $0x100] sm:$0xf]  ;;  %v1925_v42 = vor.u32 %v2264_v34, %v1924_v33  ;;  %v2228_v44 = vld [vmem:[#allocation2 + $0x20c] sm:$0xf0]  ;;  %v1734_v8 = vld [vmem:[#allocation2 + $0x1b0] sm:$0xf0] }
  0x27   :  { %967 = vmatpush.bf16.msrb.mxu2 %v1813_v25  ;;  %980 = vmatpush.bf16.msrb.mxu3 %v1941_v26  ;;  %v1780_v43 = vld [vmem:[#allocation2 + $0x200] sm:$0xf]  ;;  %v1653_v46 = vor.u32 %v2196_v36, %v1652_v35  ;;  %v2260_v49 = vld [vmem:[#allocation2 + $0x30c] sm:$0xf0]  ;;  %v2178_v11 = vld [vmem:[#allocation2 + $0x84] sm:$0xf]  ;;  %v1737_v14 = vor.u32 %v2214_v7, %v1734_v8 }
  0x28   :  { %v1908_v48 = vld [vmem:[#allocation2 + $0x300] sm:$0xf]  ;;  %v1781_v59 = vor.u32 %v2228_v44, %v1780_v43  ;;  %v2246_v12 = vld [vmem:[#allocation2 + $0x2a4] sm:$0xf]  ;;  %v1862_v15 = vld [vmem:[#allocation2 + $0x2b0] sm:$0xf0] }
  0x29   :  { %942 = vmatpush.bf16.msrb.mxu0 %v1541_v30  ;;  %955 = vmatpush.bf16.msrb.mxu1 %v1669_v31  ;;  %v1909_v60 = vor.u32 %v2260_v49, %v1908_v48  ;;  %v2278_v16 = vld [vmem:[#allocation2 + $0x3a4] sm:$0xf]  ;;  %v1990_v17 = vld [vmem:[#allocation2 + $0x3b0] sm:$0xf0]  ;;  %v1865_v21 = vor.u32 %v2246_v12, %v1862_v15  ;;  %v53_v15 = vld [vmem:[%s2629_s2] sm:$0xf] }
  0x2a   :  { %v1590_v18 = vld [vmem:[#allocation2 + $0x90] sm:$0xf0]  ;;  %v2210_v19 = vld [vmem:[#allocation2 + $0x184] sm:$0xf]  ;;  %v1993_v22 = vor.u32 %v2278_v16, %v1990_v17  ;;  %v55_v16 = vperm.slane %v53_v15, 0  ;;  %v56_v17 = vperm.slane %v53_v15, 1 }
  0x2b   :  { %968 = vmatpush.bf16.msrb.mxu2 %v1797_v41  ;;  %981 = vmatpush.bf16.msrb.mxu3 %v1925_v42  ;;  %v1718_v20 = vld [vmem:[#allocation2 + $0x190] sm:$0xf0]  ;;  %v2174_v23 = vld [vmem:[#allocation2 + $0x64] sm:$0xf]  ;;  %v1593_v25 = vor.u32 %v2178_v11, %v1590_v18  ;;  %v1561_v41 = vor.u32 %v2170_v37, %v1558_v38  ;;  %v2189_v37 = vld [vmem:[#allocation2 + $0xd4] sm:$0xf0] }
  0x2c   :  { %v2242_v24 = vld [vmem:[#allocation2 + $0x284] sm:$0xf]  ;;  %v1721_v26 = vor.u32 %v2210_v19, %v1718_v20  ;;  %v1846_v27 = vld [vmem:[#allocation2 + $0x290] sm:$0xf0]  ;;  %v1756_v38 = vld [vmem:[#allocation2 + $0x1c8] sm:$0xf] }
  0x2d   :  { %943 = vmatpush.bf16.msrb.mxu0 %v1525_v45  ;;  %956 = vmatpush.bf16.msrb.mxu1 %v1653_v46  ;;  %v2274_v28 = vld [vmem:[#allocation2 + $0x384] sm:$0xf]  ;;  %v1974_v29 = vld [vmem:[#allocation2 + $0x390] sm:$0xf0]  ;;  %v1849_v33 = vor.u32 %v2242_v24, %v1846_v27  ;;  %v1772_v24 = vld [vmem:[#allocation2 + $0x1e8] sm:$0xf] }
  0x2e   :  { %v1574_v30 = vld [vmem:[#allocation2 + $0x70] sm:$0xf0]  ;;  %v2206_v31 = vld [vmem:[#allocation2 + $0x164] sm:$0xf]  ;;  %v1977_v34 = vor.u32 %v2274_v28, %v1974_v29  ;;  %v57_v28 = vperm.slane %v53_v15, 2  ;;  %v58_v29 = vperm.slane %v53_v15, 3 }
  0x2f   :  { %969 = vmatpush.bf16.msrb.mxu2 %v1781_v59  ;;  %982 = vmatpush.bf16.msrb.mxu3 %v1909_v60  ;;  %v1702_v32 = vld [vmem:[#allocation2 + $0x170] sm:$0xf0]  ;;  %v1577_v35 = vor.u32 %v2174_v23, %v1574_v30  ;;  %v2202_v39 = vld [vmem:[#allocation2 + $0x144] sm:$0xf]  ;;  %v2193_v23 = vld [vmem:[#allocation2 + $0xf4] sm:$0xf0] }
  0x30   :  { %v1705_v36 = vor.u32 %v2206_v31, %v1702_v32  ;;  %v1686_v40 = vld [vmem:[#allocation2 + $0x150] sm:$0xf0]  ;;  %v2238_v43 = vld [vmem:[#allocation2 + $0x264] sm:$0xf] }
  0x31   :  { %988 = vmatpush.bf16.msra.mxu0 %v1641_v51  ;;  %1001 = vmatpush.bf16.msra.mxu1 %v1769_v52  ;;  %v1689_v42 = vor.u32 %v2202_v39, %v1686_v40  ;;  %v1830_v44 = vld [vmem:[#allocation2 + $0x270] sm:$0xf0]  ;;  %v2270_v45 = vld [vmem:[#allocation2 + $0x364] sm:$0xf]  ;;  %v2221_v39 = vld [vmem:[#allocation2 + $0x1d4] sm:$0xf0] }
  0x32   :  { %v1833_v46 = vor.u32 %v2238_v43, %v1830_v44  ;;  %v1958_v47 = vld [vmem:[#allocation2 + $0x370] sm:$0xf0]  ;;  %v2166_v49 = vld [vmem:[#allocation2 + $0x24] sm:$0xf]  ;;  %v2257_v43 = vld [vmem:[#allocation2 + $0x2f4] sm:$0xf0] }
  0x33   :  { %1014 = vmatpush.bf16.msra.mxu2 %v1897_v61  ;;  %1027 = vmatpush.bf16.msra.mxu3 %v2025_v62  ;;  %v1961_v48 = vor.u32 %v2270_v45, %v1958_v47  ;;  %v1542_v50 = vld [vmem:[#allocation2 + $0x30] sm:$0xf0]  ;;  %v2198_v51 = vld [vmem:[#allocation2 + $0x124] sm:$0xf] }
  0x34   :  { %v1545_v52 = vor.u32 %v2166_v49, %v1542_v50  ;;  %v1670_v53 = vld [vmem:[#allocation2 + $0x130] sm:$0xf0]  ;;  %v2234_v55 = vld [vmem:[#allocation2 + $0x244] sm:$0xf]  ;;  %v2289_v49 = vld [vmem:[#allocation2 + $0x3f4] sm:$0xf0] }
  0x35   :  { %989 = vmatpush.bf16.msra.mxu0 %v1625_v1  ;;  %1002 = vmatpush.bf16.msra.mxu1 %v1753_v2  ;;  %v1673_v54 = vor.u32 %v2198_v51, %v1670_v53  ;;  %v1814_v56 = vld [vmem:[#allocation2 + $0x250] sm:$0xf0]  ;;  %v2266_v57 = vld [vmem:[#allocation2 + $0x344] sm:$0xf]  ;;  %v1612_v50 = vld [vmem:[#allocation2 + $0xa8] sm:$0xf] }
  0x36   :  { %v1817_v58 = vor.u32 %v2234_v55, %v1814_v56  ;;  %v1942_v59 = vld [vmem:[#allocation2 + $0x350] sm:$0xf0]  ;;  %v2162_v61 = vld [vmem:[#allocation2 + $0x4] sm:$0xf]  ;;  %v2185_v53 = vld [vmem:[#allocation2 + $0xb4] sm:$0xf0] }
  0x37   :  { %1015 = vmatpush.bf16.msra.mxu2 %v1881_v9  ;;  %1028 = vmatpush.bf16.msra.mxu3 %v2009_v10  ;;  %v1945_v60 = vor.u32 %v2266_v57, %v1942_v59  ;;  %v1526_v62 = vld [vmem:[#allocation2 + $0x10] sm:$0xf0]  ;;  %v2194_v63 = vld [vmem:[#allocation2 + $0x104] sm:$0xf]  ;;  %v2217_v55 = vld [vmem:[#allocation2 + $0x1b4] sm:$0xf0] }
  0x38   :  { %v1529_v0 = vor.u32 %v2162_v61, %v1526_v62  ;;  %v1654_v1 = vld [vmem:[#allocation2 + $0x110] sm:$0xf0]  ;;  %v2230_v3 = vld [vmem:[#allocation2 + $0x224] sm:$0xf]  ;;  %v1613_v62 = vor.u32 %v2185_v53, %v1612_v50  ;;  %v2237_v53 = vld [vmem:[#allocation2 + $0x254] sm:$0xf0] }
  0x39   :  { %990 = vmatpush.bf16.msra.mxu0 %v1609_v13  ;;  %1003 = vmatpush.bf16.msra.mxu1 %v1737_v14  ;;  %v1657_v2 = vor.u32 %v2194_v63, %v1654_v1  ;;  %v1798_v4 = vld [vmem:[#allocation2 + $0x230] sm:$0xf0]  ;;  %v2262_v5 = vld [vmem:[#allocation2 + $0x324] sm:$0xf]  ;;  %v1884_v63 = vld [vmem:[#allocation2 + $0x2c8] sm:$0xf] }
  0x3a   :  { %v1801_v6 = vor.u32 %v2230_v3, %v1798_v4  ;;  %v1926_v7 = vld [vmem:[#allocation2 + $0x330] sm:$0xf0]  ;;  %v2226_v9 = vld [vmem:[#allocation2 + $0x204] sm:$0xf]  ;;  %v2012_v4 = vld [vmem:[#allocation2 + $0x3c8] sm:$0xf] }
  0x3b   :  { %1016 = vmatpush.bf16.msra.mxu2 %v1865_v21  ;;  %1029 = vmatpush.bf16.msra.mxu3 %v1993_v22  ;;  %v1929_v8 = vor.u32 %v2262_v5, %v1926_v7  ;;  %v1782_v10 = vld [vmem:[#allocation2 + $0x210] sm:$0xf0]  ;;  %v2258_v12 = vld [vmem:[#allocation2 + $0x304] sm:$0xf]  ;;  %v1644_v22 = vld [vmem:[#allocation2 + $0xe8] sm:$0xf] }
  0x3c   :  { %v1785_v11 = vor.u32 %v2226_v9, %v1782_v10  ;;  %v1910_v13 = vld [vmem:[#allocation2 + $0x310] sm:$0xf0]  ;;  %v1645_v32 = vor.u32 %v2193_v23, %v1644_v22  ;;  %v2285_v5 = vld [vmem:[#allocation2 + $0x3d4] sm:$0xf0]  ;;  %v1708_v22 = vld [vmem:[#allocation2 + $0x168] sm:$0xf] }
  0x3d   :  { %991 = vmatpush.bf16.msra.mxu0 %v1593_v25  ;;  %1004 = vmatpush.bf16.msra.mxu1 %v1721_v26  ;;  %v1913_v14 = vor.u32 %v2258_v12, %v1910_v13  ;;  %v2225_v25 = vld [vmem:[#allocation2 + $0x1f4] sm:$0xf0]  ;;  %v2013_v13 = vor.u32 %v2285_v5, %v2012_v4  ;;  %v2223_v4 = vld [vmem:[#allocation2 + $0x1ec] sm:$0xf]  ;;  %v1774_v5 = vld [vmem:[#allocation2 + $0x1f8] sm:$0xf0] }
  0x3e   :  { %v2181_v7 = vld [vmem:[#allocation2 + $0x94] sm:$0xf0] }
  0x3f   :  { %1017 = vmatpush.bf16.msra.mxu2 %v1849_v33  ;;  %1030 = vmatpush.bf16.msra.mxu3 %v1977_v34  ;;  %v1773_v33 = vor.u32 %v2225_v25, %v1772_v24  ;;  %v1628_v34 = vld [vmem:[#allocation2 + $0xc8] sm:$0xf]  ;;  %v2213_v9 = vld [vmem:[#allocation2 + $0x194] sm:$0xf0] }
  0x40   :  { %v1629_v51 = vor.u32 %v2189_v37, %v1628_v34  ;;  %v2209_v23 = vld [vmem:[#allocation2 + $0x174] sm:$0xf0]  ;;  %v1692_v34 = vld [vmem:[#allocation2 + $0x148] sm:$0xf] }
  0x41   :  { %992 = vmatpush.bf16.msra.mxu0 %v1577_v35  ;;  %1005 = vmatpush.bf16.msra.mxu1 %v1705_v36  ;;  %v2205_v37 = vld [vmem:[#allocation2 + $0x154] sm:$0xf0] }
  0x43   :  { %1018 = vmatpush.bf16.msra.mxu2 %v1833_v46  ;;  %1031 = vmatpush.bf16.msra.mxu3 %v1961_v48  ;;  %v2028_v48 = vld [vmem:[#allocation2 + $0x3e8] sm:$0xf] }
  0x44   :  { %v2029_v61 = vor.u32 %v2289_v49, %v2028_v48  ;;  %v1676_v48 = vld [vmem:[#allocation2 + $0x128] sm:$0xf]  ;;  %v2201_v49 = vld [vmem:[#allocation2 + $0x134] sm:$0xf0] }
  0x45   :  { %993 = vmatpush.bf16.msra.mxu0 %v1561_v41  ;;  %1006 = vmatpush.bf16.msra.mxu1 %v1689_v42  ;;  %v1900_v42 = vld [vmem:[#allocation2 + $0x2e8] sm:$0xf] }
  0x47   :  { %1019 = vmatpush.bf16.msra.mxu2 %v1817_v58  ;;  %1032 = vmatpush.bf16.msra.mxu3 %v1945_v60  ;;  %v1901_v58 = vor.u32 %v2257_v43, %v1900_v42  ;;  %v1964_v42 = vld [vmem:[#allocation2 + $0x368] sm:$0xf]  ;;  %v2273_v43 = vld [vmem:[#allocation2 + $0x374] sm:$0xf0] }
  0x49   :  { %994 = vmatpush.bf16.msra.mxu0 %v1545_v52  ;;  %1007 = vmatpush.bf16.msra.mxu1 %v1673_v54  ;;  %v1757_v52 = vor.u32 %v2221_v39, %v1756_v38  ;;  %v1740_v54 = vld [vmem:[#allocation2 + $0x1a8] sm:$0xf] }
  0x4a   :  { %v1741_v3 = vor.u32 %v2217_v55, %v1740_v54  ;;  %v1948_v54 = vld [vmem:[#allocation2 + $0x348] sm:$0xf]  ;;  %v2269_v55 = vld [vmem:[#allocation2 + $0x354] sm:$0xf0] }
  0x4b   :  { %1020 = vmatpush.bf16.msra.mxu2 %v1801_v6  ;;  %1033 = vmatpush.bf16.msra.mxu3 %v1929_v8  ;;  %v1596_v6 = vld [vmem:[#allocation2 + $0x88] sm:$0xf] }
  0x4c   :  { %v1724_v8 = vld [vmem:[#allocation2 + $0x188] sm:$0xf]  ;;  %v1597_v15 = vor.u32 %v2181_v7, %v1596_v6  ;;  %v2233_v7 = vld [vmem:[#allocation2 + $0x234] sm:$0xf0] }
  0x4d   :  { %995 = vmatpush.bf16.msra.mxu0 %v1529_v0  ;;  %1008 = vmatpush.bf16.msra.mxu1 %v1657_v2  ;;  %v2253_v0 = vld [vmem:[#allocation2 + $0x2d4] sm:$0xf0]  ;;  %v1804_v6 = vld [vmem:[#allocation2 + $0x228] sm:$0xf] }
  0x4e   :  { %v1885_v12 = vor.u32 %v2253_v0, %v1884_v63  ;;  %v1646_v63 = vld [vmem:[#allocation2 + $0xf8] sm:$0xf0] }
  0x4f   :  { %1021 = vmatpush.bf16.msra.mxu2 %v1785_v11  ;;  %1034 = vmatpush.bf16.msra.mxu3 %v1913_v14  ;;  %v1868_v14 = vld [vmem:[#allocation2 + $0x2a8] sm:$0xf] }
  0x8d   :  { %v99_v18 = vpop.f32.mrf.mxu0  ;;  %v112_v19 = vpop.f32.mrf.mxu1 }
  0x8e   :  { %v100_v20 = vadd.f32 %v99_v18, %v55_v16  ;;  %v113_v21 = vadd.f32 %v112_v19, %v56_v17  ;;  %v1725_v16 = vor.u32 %v2213_v9, %v1724_v8  ;;  %v2249_v17 = vld [vmem:[#allocation2 + $0x2b4] sm:$0xf0]  ;;  %v1996_v18 = vld [vmem:[#allocation2 + $0x3a8] sm:$0xf] }
  0x8f   :  { %v2281_v19 = vld [vmem:[#allocation2 + $0x3b4] sm:$0xf0]  ;;  %v1869_v24 = vor.u32 %v2249_v17, %v1868_v14  ;;  %v1932_v8 = vld [vmem:[#allocation2 + $0x328] sm:$0xf]  ;;  %v2187_v14 = vld [vmem:[#allocation2 + $0xcc] sm:$0xf]  ;;  %v1805_v17 = vor.u32 %v2233_v7, %v1804_v6 }
  0x90   :  { %vm142_vm2 = vcmp.ge.f32.partialorder %v100_v20, 0.0  ;;  %v146_v26 = vmul.f32 0.2, %v100_v20  ;;  %vm143_vm3 = vcmp.ge.f32.partialorder %v113_v21, 0.0  ;;  %v147_v27 = vmul.f32 0.2, %v113_v21 }
  0x91   :  { %v1997_v25 = vor.u32 %v2281_v19, %v1996_v18  ;;  %v2265_v9 = vld [vmem:[#allocation2 + $0x334] sm:$0xf0]  ;;  %v1758_v19 = vld [vmem:[#allocation2 + $0x1d8] sm:$0xf0] }
  0x92   :  { %v150_v30 = vsel %vm142_vm2, %v100_v20, %v146_v26  ;;  %v151_v31 = vsel %vm143_vm3, %v113_v21, %v147_v27  ;;  %v1580_v20 = vld [vmem:[#allocation2 + $0x68] sm:$0xf]  ;;  %v2177_v21 = vld [vmem:[#allocation2 + $0x74] sm:$0xf0]  ;;  %v1933_v18 = vor.u32 %v2265_v9, %v1932_v8  ;;  %v2171_v8 = vld [vmem:[#allocation2 + $0x4c] sm:$0xf] }
  0x93   :  { %v2486_v35 = vpack.c.bf16 %v150_v30, %v150_v30  ;;  %v2488_v36 = vpack.c.bf16 %v151_v31, %v151_v31  ;;  %v1852_v26 = vld [vmem:[#allocation2 + $0x288] sm:$0xf]  ;;  %v2245_v27 = vld [vmem:[#allocation2 + $0x294] sm:$0xf0]  ;;  %v1581_v30 = vor.u32 %v2177_v21, %v1580_v20  ;;  %v1709_v31 = vor.u32 %v2209_v23, %v1708_v22  ;;  %v1566_v9 = vld [vmem:[#allocation2 + $0x58] sm:$0xf0] }
  0x94   :  { %v1853_v38 = vor.u32 %v2245_v27, %v1852_v26  ;;  %v1788_v20 = vld [vmem:[#allocation2 + $0x208] sm:$0xf]  ;;  %v2229_v21 = vld [vmem:[#allocation2 + $0x214] sm:$0xf0]  ;;  %v2287_v26 = vld [vmem:[#allocation2 + $0x3ec] sm:$0xf] }
  0x95   :  { %v125_v40 = vpop.f32.mrf.mxu2  ;;  %v138_v41 = vpop.f32.mrf.mxu3  ;;  %944 = vmatmul.bf16.vlgmr.msrb.gmra.mxu0 %v2486_v35  ;;  %957 = vmatmul.bf16.vlgmr.msrb.gmra.mxu1 %v2488_v36  ;;  %v1916_v22 = vld [vmem:[#allocation2 + $0x308] sm:$0xf]  ;;  %v2261_v23 = vld [vmem:[#allocation2 + $0x314] sm:$0xf0]  ;;  %v2030_v27 = vld [vmem:[#allocation2 + $0x3f8] sm:$0xf0] }
  0x96   :  { %v126_v44 = vadd.f32 %v125_v40, %v57_v28  ;;  %v139_v45 = vadd.f32 %v138_v41, %v58_v29  ;;  %v101_v46 = vpop.f32.mrf.mxu0  ;;  %v114_v47 = vpop.f32.mrf.mxu1  ;;  %1040 = vmatpush.bf16.msrb.mxu0 %v1645_v32  ;;  %1053 = vmatpush.bf16.msrb.mxu1 %v1773_v33  ;;  %v1980_v28 = vld [vmem:[#allocation2 + $0x388] sm:$0xf]  ;;  %v2277_v29 = vld [vmem:[#allocation2 + $0x394] sm:$0xf0] }
  0x97   :  { %v1564_v32 = vld [vmem:[#allocation2 + $0x48] sm:$0xf]  ;;  %v2173_v33 = vld [vmem:[#allocation2 + $0x54] sm:$0xf0]  ;;  %v1981_v39 = vor.u32 %v2277_v29, %v1980_v28 }
  0x98   :  { %vm144_vm4 = vcmp.ge.f32.partialorder %v126_v44, 0.0  ;;  %v148_v56 = vmul.f32 0.2, %v126_v44  ;;  %vm145_vm5 = vcmp.ge.f32.partialorder %v139_v45, 0.0  ;;  %v149_v57 = vmul.f32 0.2, %v139_v45 }
  0x99   :  { %v1836_v40 = vld [vmem:[#allocation2 + $0x268] sm:$0xf]  ;;  %v2241_v41 = vld [vmem:[#allocation2 + $0x274] sm:$0xf0] }
  0x9a   :  { %v152_v59 = vsel %vm144_vm4, %v126_v44, %v148_v56  ;;  %v153_v60 = vsel %vm145_vm5, %v139_v45, %v149_v57  ;;  %1041 = vmatpush.bf16.msrb.mxu0 %v1629_v51  ;;  %1054 = vmatpush.bf16.msrb.mxu1 %v1757_v52  ;;  %v1565_v44 = vor.u32 %v2173_v33, %v1564_v32  ;;  %v1548_v46 = vld [vmem:[#allocation2 + $0x28] sm:$0xf]  ;;  %v2169_v47 = vld [vmem:[#allocation2 + $0x34] sm:$0xf0]  ;;  %v1614_v33 = vld [vmem:[#allocation2 + $0xb8] sm:$0xf0] }
  0x9b   :  { %v2492_v1 = vpack.c.bf16 %v152_v59, %v152_v59  ;;  %v2494_v2 = vpack.c.bf16 %v153_v60, %v153_v60  ;;  %v1693_v45 = vor.u32 %v2205_v37, %v1692_v34  ;;  %v1837_v50 = vor.u32 %v2241_v41, %v1836_v40  ;;  %v1820_v52 = vld [vmem:[#allocation2 + $0x248] sm:$0xf]  ;;  %v2165_v59 = vld [vmem:[#allocation2 + $0x14] sm:$0xf0]  ;;  %v2215_v34 = vld [vmem:[#allocation2 + $0x1ac] sm:$0xf] }
  0x9c   :  { %v1965_v51 = vor.u32 %v2273_v43, %v1964_v42  ;;  %v1549_v56 = vor.u32 %v2169_v47, %v1548_v46  ;;  %v1677_v57 = vor.u32 %v2201_v49, %v1676_v48  ;;  %v1660_v60 = vld [vmem:[#allocation2 + $0x108] sm:$0xf]  ;;  %v1821_v0 = vor.u32 %v2237_v53, %v1820_v52  ;;  %v1742_v37 = vld [vmem:[#allocation2 + $0x1b8] sm:$0xf0]  ;;  %v2251_v40 = vld [vmem:[#allocation2 + $0x2cc] sm:$0xf] }
  0x9d   :  { %v127_v10 = vpop.f32.mrf.mxu2  ;;  %v140_v11 = vpop.f32.mrf.mxu3  ;;  %970 = vmatmul.bf16.vlgmr.msrb.gmra.mxu2 %v2492_v1  ;;  %983 = vmatmul.bf16.vlgmr.msrb.gmra.mxu3 %v2494_v2  ;;  %v1917_v32 = vor.u32 %v2261_v23, %v1916_v22  ;;  %v1886_v41 = vld [vmem:[#allocation2 + $0x2d8] sm:$0xf0]  ;;  %v2283_v42 = vld [vmem:[#allocation2 + $0x3cc] sm:$0xf] }
  0x9e   :  { %1066 = vmatpush.bf16.msrb.mxu2 %v1901_v58  ;;  %1079 = vmatpush.bf16.msrb.mxu3 %v2029_v61  ;;  %v1532_v58 = vld [vmem:[#allocation2 + $0x8] sm:$0xf]  ;;  %v2197_v61 = vld [vmem:[#allocation2 + $0x114] sm:$0xf0]  ;;  %v2014_v43 = vld [vmem:[#allocation2 + $0x3d8] sm:$0xf0] }
  0x9f   :  { %1042 = vmatpush.bf16.msrb.mxu0 %v1613_v62  ;;  %1055 = vmatpush.bf16.msrb.mxu1 %v1741_v3  ;;  %v2191_v62 = vld [vmem:[#allocation2 + $0xec] sm:$0xf]  ;;  %v1949_v3 = vor.u32 %v2269_v55, %v1948_v54  ;;  %v1533_v10 = vor.u32 %v2165_v59, %v1532_v58  ;;  %v1661_v11 = vor.u32 %v2197_v61, %v1660_v60  ;;  %v1598_v47 = vld [vmem:[#allocation2 + $0x98] sm:$0xf0] }
  0xa0   :  { %v2179_v46 = vld [vmem:[#allocation2 + $0x8c] sm:$0xf]  ;;  %v1726_v49 = vld [vmem:[#allocation2 + $0x198] sm:$0xf0] }
  0xa1   :  { %v2211_v48 = vld [vmem:[#allocation2 + $0x18c] sm:$0xf]  ;;  %v1870_v53 = vld [vmem:[#allocation2 + $0x2b8] sm:$0xf0] }
  0xa2   :  { %1067 = vmatpush.bf16.msrb.mxu2 %v1885_v12  ;;  %1080 = vmatpush.bf16.msrb.mxu3 %v2013_v13  ;;  %v1649_v12 = vor.u32 %v2191_v62, %v1646_v63  ;;  %v1777_v13 = vor.u32 %v2223_v4, %v1774_v5  ;;  %v2247_v52 = vld [vmem:[#allocation2 + $0x2ac] sm:$0xf]  ;;  %v1998_v55 = vld [vmem:[#allocation2 + $0x3b8] sm:$0xf0] }
  0xa3   :  { %1043 = vmatpush.bf16.msrb.mxu0 %v1597_v15  ;;  %1056 = vmatpush.bf16.msrb.mxu1 %v1725_v16  ;;  %v1630_v15 = vld [vmem:[#allocation2 + $0xd8] sm:$0xf0]  ;;  %v2219_v16 = vld [vmem:[#allocation2 + $0x1cc] sm:$0xf]  ;;  %v1873_v62 = vor.u32 %v2247_v52, %v1870_v53  ;;  %v2296_v53 = vld [vmem:[%s2632_s5 + $0x30] sm:$0xff] }
  0xa4   :  { %v1633_v28 = vor.u32 %v2187_v14, %v1630_v15  ;;  %v1761_v29 = vor.u32 %v2219_v16, %v1758_v19  ;;  %v2279_v54 = vld [vmem:[#allocation2 + $0x3ac] sm:$0xf]  ;;  %v1582_v59 = vld [vmem:[#allocation2 + $0x78] sm:$0xf0] }
  0xa5   :  { %996 = vmatmul.bf16.vlgmr.msra.gmra.mxu0 %v2486_v35  ;;  %1009 = vmatmul.bf16.vlgmr.msra.gmra.mxu1 %v2488_v36  ;;  %v2175_v58 = vld [vmem:[#allocation2 + $0x6c] sm:$0xf]  ;;  %v1710_v61 = vld [vmem:[#allocation2 + $0x178] sm:$0xf0]  ;;  %v2001_v63 = vor.u32 %v2279_v54, %v1998_v55 }
  0xa6   :  { %1068 = vmatpush.bf16.msrb.mxu2 %v1869_v24  ;;  %1081 = vmatpush.bf16.msrb.mxu3 %v1997_v25  ;;  %v2255_v24 = vld [vmem:[#allocation2 + $0x2ec] sm:$0xf]  ;;  %v1902_v25 = vld [vmem:[#allocation2 + $0x2f8] sm:$0xf0]  ;;  %v1585_v6 = vor.u32 %v2175_v58, %v1582_v59 }
  0xa7   :  { %1044 = vmatpush.bf16.msrb.mxu0 %v1581_v30  ;;  %1057 = vmatpush.bf16.msrb.mxu1 %v1709_v31  ;;  %v2183_v30 = vld [vmem:[#allocation2 + $0xac] sm:$0xf]  ;;  %v1789_v31 = vor.u32 %v2229_v21, %v1788_v20  ;;  %v1982_v5 = vld [vmem:[#allocation2 + $0x398] sm:$0xf0] }
  0xa8   :  { %v2207_v60 = vld [vmem:[#allocation2 + $0x16c] sm:$0xf]  ;;  %v1838_v15 = vld [vmem:[#allocation2 + $0x278] sm:$0xf0] }
  0xa9   :  { %v2275_v4 = vld [vmem:[#allocation2 + $0x38c] sm:$0xf]  ;;  %v1713_v7 = vor.u32 %v2207_v60, %v1710_v61  ;;  %v1550_v21 = vld [vmem:[#allocation2 + $0x38] sm:$0xf0]  ;;  %v2290_v60 = vld [vmem:[%s2632_s5] sm:$0xff] }
  0xaa   :  { %1069 = vmatpush.bf16.msrb.mxu2 %v1853_v38  ;;  %1082 = vmatpush.bf16.msrb.mxu3 %v1981_v39  ;;  %v1905_v38 = vor.u32 %v2255_v24, %v1902_v25  ;;  %v2033_v39 = vor.u32 %v2287_v26, %v2030_v27  ;;  %v2239_v14 = vld [vmem:[#allocation2 + $0x26c] sm:$0xf]  ;;  %v1678_v23 = vld [vmem:[#allocation2 + $0x138] sm:$0xf0]  ;;  %v2302_v61 = vld [vmem:[%s2632_s5 + $0x60] sm:$0xff] }
  0xab   :  { %1045 = vmatpush.bf16.msrb.mxu0 %v1565_v44  ;;  %1058 = vmatpush.bf16.msrb.mxu1 %v1693_v45  ;;  %v1617_v44 = vor.u32 %v2183_v30, %v1614_v33  ;;  %v1745_v45 = vor.u32 %v2215_v34, %v1742_v37  ;;  %v2271_v16 = vld [vmem:[#allocation2 + $0x36c] sm:$0xf]  ;;  %v1841_v24 = vor.u32 %v2239_v14, %v1838_v15  ;;  %v1822_v27 = vld [vmem:[#allocation2 + $0x258] sm:$0xf0] }
  0xac   :  { %v2167_v20 = vld [vmem:[#allocation2 + $0x2c] sm:$0xf]  ;;  %v1534_v33 = vld [vmem:[#allocation2 + $0x18] sm:$0xf0] }
  0xad   :  { %1022 = vmatmul.bf16.vlgmr.msra.gmra.mxu2 %v2492_v1  ;;  %1035 = vmatmul.bf16.vlgmr.msra.gmra.mxu3 %v2494_v2  ;;  %v2199_v22 = vld [vmem:[#allocation2 + $0x12c] sm:$0xf]  ;;  %v1553_v30 = vor.u32 %v2167_v20, %v1550_v21  ;;  %v1662_v37 = vld [vmem:[#allocation2 + $0x118] sm:$0xf0] }
  0xae   :  { %1070 = vmatpush.bf16.msrb.mxu2 %v1837_v50  ;;  %1083 = vmatpush.bf16.msrb.mxu3 %v1965_v51  ;;  %v1889_v50 = vor.u32 %v2251_v40, %v1886_v41  ;;  %v2017_v51 = vor.u32 %v2283_v42, %v2014_v43  ;;  %v2235_v26 = vld [vmem:[#allocation2 + $0x24c] sm:$0xf]  ;;  %v1806_v41 = vld [vmem:[#allocation2 + $0x238] sm:$0xf0] }
  0xaf   :  { %1046 = vmatpush.bf16.msrb.mxu0 %v1549_v56  ;;  %1059 = vmatpush.bf16.msrb.mxu1 %v1677_v57  ;;  %v1601_v56 = vor.u32 %v2179_v46, %v1598_v47  ;;  %v1729_v57 = vor.u32 %v2211_v48, %v1726_v49  ;;  %v2195_v34 = vld [vmem:[#allocation2 + $0x10c] sm:$0xf]  ;;  %v1934_v43 = vld [vmem:[#allocation2 + $0x338] sm:$0xf0] }
  0xb0   :  { %v2231_v40 = vld [vmem:[#allocation2 + $0x22c] sm:$0xf]  ;;  %v2297_v46 = vld [vmem:[%s2632_s5 + $0x38] sm:$0xff] }
  0xb1   :  { %v2263_v42 = vld [vmem:[#allocation2 + $0x32c] sm:$0xf]  ;;  %v1809_v47 = vor.u32 %v2231_v40, %v1806_v41  ;;  %v1918_v52 = vld [vmem:[#allocation2 + $0x318] sm:$0xf0] }
  0xb2   :  { %1071 = vmatpush.bf16.msrb.mxu2 %v1821_v0  ;;  %1084 = vmatpush.bf16.msrb.mxu3 %v1949_v3  ;;  %v2243_v0 = vld [vmem:[#allocation2 + $0x28c] sm:$0xf]  ;;  %v1854_v3 = vld [vmem:[#allocation2 + $0x298] sm:$0xf0]  ;;  %v1937_v48 = vor.u32 %v2263_v42, %v1934_v43 }
  0xb3   :  { %1047 = vmatpush.bf16.msrb.mxu0 %v1533_v10  ;;  %1060 = vmatpush.bf16.msrb.mxu1 %v1661_v11  ;;  %v2203_v10 = vld [vmem:[#allocation2 + $0x14c] sm:$0xf]  ;;  %v1694_v11 = vld [vmem:[#allocation2 + $0x158] sm:$0xf0] }
  0xb4   :  { %v1697_v19 = vor.u32 %v2203_v10, %v1694_v11  ;;  %v2227_v49 = vld [vmem:[#allocation2 + $0x20c] sm:$0xf]  ;;  %v2310_v10 = vld [vmem:[%s2632_s5 + $0xa0] sm:$0xff] }
  0xb5   :  { %v2291_v58 = vld [vmem:[%s2632_s5 + $0x8] sm:$0xff] }
  0xb6   :  { %1072 = vmatpush.bf16.msrb.mxu2 %v1805_v17  ;;  %1085 = vmatpush.bf16.msrb.mxu3 %v1933_v18  ;;  %v1966_v17 = vld [vmem:[#allocation2 + $0x378] sm:$0xf0]  ;;  %v1569_v18 = vor.u32 %v2171_v8, %v1566_v9  ;;  %v2303_v59 = vld [vmem:[%s2632_s5 + $0x68] sm:$0xff]  ;;  %v2567_v8 = vld [vmem:[%s2631_s4] sm:$0xf] }
  0xb7   :  { %1092 = vmatpush.bf16.msra.mxu0 %v1649_v12  ;;  %1105 = vmatpush.bf16.msra.mxu1 %v1777_v13  ;;  %v1857_v12 = vor.u32 %v2243_v0, %v1854_v3  ;;  %v1985_v13 = vor.u32 %v2275_v4, %v1982_v5  ;;  %v1969_v25 = vor.u32 %v2271_v16, %v1966_v17  ;;  %v2300_v0 = vld [vmem:[%s2632_s5 + $0x50] sm:$0xff]  ;;  %v2299_v4 = vld [vmem:[%s2632_s5 + $0x48] sm:$0xff]  ;;  %v2298_v9 = vld [vmem:[%s2632_s5 + $0x40] sm:$0xff]  ;;  %v288_v11 = vperm.slane %v2567_v8, 0 }
  0xb8   :  { %1048 = vmatmul.bf16.vlgmr.msrb.gmra.mxu0 %v2486_v35  ;;  %1061 = vmatmul.bf16.vlgmr.msrb.gmra.mxu1 %v2488_v36  ;;  %v2312_v3 = vld [vmem:[%s2632_s5 + $0xb0] sm:$0xff]  ;;  %v2311_v5 = vld [vmem:[%s2632_s5 + $0xa8] sm:$0xff] }
  0xb9   :  { %v2308_v16 = vld [vmem:[%s2632_s5 + $0x90] sm:$0xff]  ;;  %v2307_v21 = vld [vmem:[%s2632_s5 + $0x88] sm:$0xff] }
  0xba   :  { %1073 = vmatpush.bf16.msrb.mxu2 %v1789_v31  ;;  %1086 = vmatpush.bf16.msrb.mxu3 %v1917_v32  ;;  %v1681_v31 = vor.u32 %v2199_v22, %v1678_v23  ;;  %v2163_v32 = vld [vmem:[#allocation2 + $0xc] sm:$0xf] }
  0xbb   :  { %1093 = vmatpush.bf16.msra.mxu0 %v1633_v28  ;;  %1106 = vmatpush.bf16.msra.mxu1 %v1761_v29  ;;  %v2267_v28 = vld [vmem:[#allocation2 + $0x34c] sm:$0xf]  ;;  %v1950_v29 = vld [vmem:[#allocation2 + $0x358] sm:$0xf0] }
  0xbd   :  { %1074 = vmatmul.bf16.vlgmr.msrb.gmra.mxu2 %v2492_v1  ;;  %1087 = vmatmul.bf16.vlgmr.msrb.gmra.mxu3 %v2494_v2 }
  0xbe   :  { %1118 = vmatpush.bf16.msra.mxu2 %v1905_v38  ;;  %1131 = vmatpush.bf16.msra.mxu3 %v2033_v39  ;;  %v1825_v38 = vor.u32 %v2235_v26, %v1822_v27  ;;  %v1953_v39 = vor.u32 %v2267_v28, %v1950_v29  ;;  %v2306_v26 = vld [vmem:[%s2632_s5 + $0x80] sm:$0xff]  ;;  %v2321_v27 = vld [vmem:[%s2632_s5 + $0xf8] sm:$0xff]  ;;  %v289_v29 = vperm.slane %v2567_v8, 1 }
  0xbf   :  { %1094 = vmatpush.bf16.msra.mxu0 %v1617_v44  ;;  %1107 = vmatpush.bf16.msra.mxu1 %v1745_v45  ;;  %v1537_v44 = vor.u32 %v2163_v32, %v1534_v33  ;;  %v1665_v45 = vor.u32 %v2195_v34, %v1662_v37  ;;  %v2320_v33 = vld [vmem:[%s2632_s5 + $0xf0] sm:$0xff] }
  0xc2   :  { %1119 = vmatpush.bf16.msra.mxu2 %v1889_v50  ;;  %1132 = vmatpush.bf16.msra.mxu3 %v2017_v51  ;;  %v1790_v50 = vld [vmem:[#allocation2 + $0x218] sm:$0xf0]  ;;  %v2259_v51 = vld [vmem:[#allocation2 + $0x30c] sm:$0xf] }
  0xc3   :  { %1095 = vmatpush.bf16.msra.mxu0 %v1601_v56  ;;  %1108 = vmatpush.bf16.msra.mxu1 %v1729_v57  ;;  %v1793_v54 = vor.u32 %v2227_v49, %v1790_v50  ;;  %v1921_v55 = vor.u32 %v2259_v51, %v1918_v52  ;;  %v2295_v56 = vld [vmem:[%s2632_s5 + $0x28] sm:$0xff]  ;;  %v2294_v57 = vld [vmem:[%s2632_s5 + $0x20] sm:$0xff]  ;;  %v290_v52 = vperm.slane %v2567_v8, 2 }
  0xc6   :  { %1120 = vmatpush.bf16.msra.mxu2 %v1873_v62  ;;  %1133 = vmatpush.bf16.msra.mxu3 %v2001_v63  ;;  %v2301_v62 = vld [vmem:[%s2632_s5 + $0x58] sm:$0xff] }
  0xc7   :  { %1096 = vmatpush.bf16.msra.mxu0 %v1585_v6  ;;  %1109 = vmatpush.bf16.msra.mxu1 %v1713_v7  ;;  %v2313_v63 = vld [vmem:[%s2632_s5 + $0xb8] sm:$0xff] }
  0xca   :  { %1121 = vmatpush.bf16.msra.mxu2 %v1857_v12  ;;  %1134 = vmatpush.bf16.msra.mxu3 %v1985_v13  ;;  %v2309_v12 = vld [vmem:[%s2632_s5 + $0x98] sm:$0xff] }
  0xcb   :  { %1097 = vmatpush.bf16.msra.mxu0 %v1569_v18  ;;  %1110 = vmatpush.bf16.msra.mxu1 %v1697_v19 }
  0xce   :  { %1122 = vmatpush.bf16.msra.mxu2 %v1841_v24  ;;  %1135 = vmatpush.bf16.msra.mxu3 %v1969_v25 }
  0xcf   :  { %1098 = vmatpush.bf16.msra.mxu0 %v1553_v30  ;;  %1111 = vmatpush.bf16.msra.mxu1 %v1681_v31 }
  0xd2   :  { %1123 = vmatpush.bf16.msra.mxu2 %v1825_v38  ;;  %1136 = vmatpush.bf16.msra.mxu3 %v1953_v39  ;;  %v2319_v39 = vld [vmem:[%s2632_s5 + $0xe8] sm:$0xff] }
  0xd3   :  { %1099 = vmatpush.bf16.msra.mxu0 %v1537_v44  ;;  %1112 = vmatpush.bf16.msra.mxu1 %v1665_v45  ;;  %v2318_v44 = vld [vmem:[%s2632_s5 + $0xe0] sm:$0xff] }
  0xd6   :  { %1124 = vmatpush.bf16.msra.mxu2 %v1809_v47  ;;  %1137 = vmatpush.bf16.msra.mxu3 %v1937_v48  ;;  %v2317_v48 = vld [vmem:[%s2632_s5 + $0xd8] sm:$0xff] }
  0xd7   :  { %1420 = vmatpush.bf16.msrb.mxu0 %v2297_v46  ;;  %1113 = vmatmul.bf16.vlgmr.msra.gmra.mxu1 %v2488_v36  ;;  %v2293_v36 = vld [vmem:[%s2632_s5 + $0x18] sm:$0xff] }
  0xd8   :  { %1100 = vmatmul.bf16.vlgmr.msra.gmra.mxu0 %v2486_v35  ;;  %v2305_v35 = vld [vmem:[%s2632_s5 + $0x78] sm:$0xff] }
  0xd9   :  { %1433 = vmatpush.bf16.msrb.mxu1 %v2305_v35 }
  0xda   :  { %1125 = vmatpush.bf16.msra.mxu2 %v1793_v54  ;;  %1138 = vmatpush.bf16.msra.mxu3 %v1921_v55  ;;  %v2316_v55 = vld [vmem:[%s2632_s5 + $0xd0] sm:$0xff] }
  0xdb   :  { %1421 = vmatpush.bf16.msrb.mxu0 %v2296_v53 }
  0xdd   :  { %1126 = vmatmul.bf16.vlgmr.msra.gmra.mxu2 %v2492_v1  ;;  %1139 = vmatmul.bf16.vlgmr.msra.gmra.mxu3 %v2494_v2  ;;  %v2304_v1 = vld [vmem:[%s2632_s5 + $0x70] sm:$0xff] }
  0xde   :  { %v2292_v2 = vld [vmem:[%s2632_s5 + $0x10] sm:$0xff]  ;;  %1434 = vmatpush.bf16.msrb.mxu1 %v2304_v1  ;;  %1446 = vmatpush.bf16.msrb.mxu2 %v2313_v63 }
  0xdf   :  { %1422 = vmatpush.bf16.msrb.mxu0 %v2295_v56  ;;  %1459 = vmatpush.bf16.msrb.mxu3 %v2321_v27  ;;  %v2328_v27 = vld [vmem:[%s2633_s6] ss:$0 sm:$0xff]  ;;  %s2412_s6 = smov [#allocation5]  }
  0xe0   :  { %s1490_s0 = sshll.u32 %s2412_s6, 4  ;;  %s1491_s0 = int_to_ptr.vmem [resolvable:$true] %s1490_s0 }
  0xe2   :  { %1435 = vmatpush.bf16.msrb.mxu1 %v2303_v59  ;;  %1447 = vmatpush.bf16.msrb.mxu2 %v2312_v3 }
  0xe3   :  { %1423 = vmatpush.bf16.msrb.mxu0 %v2294_v57  ;;  %1460 = vmatpush.bf16.msrb.mxu3 %v2320_v33 }
  0xe6   :  { %1436 = vmatpush.bf16.msrb.mxu1 %v2302_v61  ;;  %1448 = vmatpush.bf16.msrb.mxu2 %v2311_v5 }
  0xe7   :  { %1424 = vmatpush.bf16.msrb.mxu0 %v2293_v36  ;;  %1461 = vmatpush.bf16.msrb.mxu3 %v2319_v39  ;;  %v2315_v36 = vld [vmem:[%s2632_s5 + $0xc8] sm:$0xff] }
  0xea   :  { %1437 = vmatpush.bf16.msrb.mxu1 %v2301_v62  ;;  %1449 = vmatpush.bf16.msrb.mxu2 %v2310_v10 }
  0xeb   :  { %1425 = vmatpush.bf16.msrb.mxu0 %v2292_v2  ;;  %1462 = vmatpush.bf16.msrb.mxu3 %v2318_v44 }
  0xee   :  { %1438 = vmatpush.bf16.msrb.mxu1 %v2300_v0  ;;  %1450 = vmatpush.bf16.msrb.mxu2 %v2309_v12 }
  0xef   :  { %1426 = vmatpush.bf16.msrb.mxu0 %v2291_v58  ;;  %1463 = vmatpush.bf16.msrb.mxu3 %v2317_v48 }
  0xf2   :  { %1439 = vmatpush.bf16.msrb.mxu1 %v2299_v4  ;;  %1451 = vmatpush.bf16.msrb.mxu2 %v2308_v16 }
  0xf3   :  { %1427 = vmatpush.bf16.msrb.mxu0 %v2290_v60  ;;  %1464 = vmatpush.bf16.msrb.mxu3 %v2316_v55  ;;  %v2314_v60 = vld [vmem:[%s2632_s5 + $0xc0] sm:$0xff] }
  0xf6   :  { %1440 = vmatpush.bf16.msrb.mxu1 %v2298_v9  ;;  %1452 = vmatpush.bf16.msrb.mxu2 %v2307_v21 }
  0xf7   :  { %1465 = vmatpush.bf16.msrb.mxu3 %v2315_v36 }
  0xfa   :  { %1453 = vmatpush.bf16.msrb.mxu2 %v2306_v26 }
  0xfb   :  { %1466 = vmatpush.bf16.msrb.mxu3 %v2314_v60 }
 0x112   :  { %v945_v6 = vpop.f32.mrf.mxu0  ;;  %v958_v7 = vpop.f32.mrf.mxu1 }
 0x113   :  { %v946_v13 = vadd.f32 %v945_v6, %v288_v11 }
 0x115   :  { %v959_v17 = vadd.f32 %v958_v7, %v946_v13  ;;  %v291_v7 = vperm.slane %v2567_v8, 3 }
 0x11a   :  { %v947_v14 = vpop.f32.mrf.mxu0  ;;  %v960_v15 = vpop.f32.mrf.mxu1 }
 0x120   :  { %v971_v18 = vpop.f32.mrf.mxu2  ;;  %v984_v19 = vpop.f32.mrf.mxu3 }
 0x121   :  { %v972_v20 = vadd.f32 %v971_v18, %v959_v17 }
 0x122   :  { %v997_v23 = vpop.f32.mrf.mxu0  ;;  %v1010_v24 = vpop.f32.mrf.mxu1 }
 0x123   :  { %v985_v22 = vadd.f32 %v984_v19, %v972_v20  ;;  %v998_v34 = vadd.f32 %v997_v23, %v289_v29 }
 0x125   :  { %vm1144_vm6 = vcmp.ge.f32.partialorder %v985_v22, 0.0  ;;  %v1148_v25 = vmul.f32 0.2, %v985_v22  ;;  %v1011_v40 = vadd.f32 %v1010_v24, %v998_v34  ;;  %v1472_v34 = vld [vmem:[%s2634_s7] sm:$0xff] }
 0x127   :  { %v1152_v28 = vsel %vm1144_vm6, %v985_v22, %v1148_v25 }
 0x128   :  { %v1156_v30 = vpack.c.bf16 %v1152_v28, %v1152_v28  ;;  %1481 = vst [vmem:[#allocation6] sm:$0xff] %v1152_v28  ;;  %v973_v31 = vpop.f32.mrf.mxu2  ;;  %v986_v32 = vpop.f32.mrf.mxu3 }
 0x12a   :  { %1428 = vmatmul.bf16.vlgmr.msrb.gmra.mxu0 %v1156_v30  ;;  %v999_v37 = vpop.f32.mrf.mxu0  ;;  %v1012_v38 = vpop.f32.mrf.mxu1 }
 0x130   :  { %v1023_v41 = vpop.f32.mrf.mxu2  ;;  %v1036_v42 = vpop.f32.mrf.mxu3 }
 0x131   :  { %v1024_v43 = vadd.f32 %v1023_v41, %v1011_v40 }
 0x133   :  { %v1037_v45 = vadd.f32 %v1036_v42, %v1024_v43 }
 0x135   :  { %v1049_v46 = vpop.f32.mrf.mxu0  ;;  %v1062_v47 = vpop.f32.mrf.mxu1  ;;  %vm1145_vm7 = vcmp.ge.f32.partialorder %v1037_v45, 0.0  ;;  %v1149_v49 = vmul.f32 0.2, %v1037_v45 }
 0x136   :  { %v1050_v56 = vadd.f32 %v1049_v46, %v290_v52 }
 0x137   :  { %v1153_v50 = vsel %vm1145_vm7, %v1037_v45, %v1149_v49 }
 0x138   :  { %v1157_v51 = vpack.c.bf16 %v1153_v50, %v1153_v50  ;;  %1482 = vst [vmem:[#allocation6 + $0x8] sm:$0xff] %v1153_v50  ;;  %v1025_v53 = vpop.f32.mrf.mxu2  ;;  %v1038_v54 = vpop.f32.mrf.mxu3  ;;  %v1063_v1 = vadd.f32 %v1062_v47, %v1050_v56 }
 0x13a   :  { %1441 = vmatmul.bf16.vlgmr.msrb.gmra.mxu1 %v1157_v51 }
 0x13d   :  { %v1051_v57 = vpop.f32.mrf.mxu0  ;;  %v1064_v35 = vpop.f32.mrf.mxu1 }
 0x140   :  { %v1075_v2 = vpop.f32.mrf.mxu2  ;;  %v1088_v58 = vpop.f32.mrf.mxu3 }
 0x141   :  { %v1076_v59 = vadd.f32 %v1075_v2, %v1063_v1 }
 0x143   :  { %v1089_v61 = vadd.f32 %v1088_v58, %v1076_v59 }
 0x145   :  { %vm1146_vm8 = vcmp.ge.f32.partialorder %v1089_v61, 0.0  ;;  %v1150_v62 = vmul.f32 0.2, %v1089_v61 }
 0x147   :  { %v1154_v63 = vsel %vm1146_vm8, %v1089_v61, %v1150_v62 }
 0x148   :  { %v1158_v0 = vpack.c.bf16 %v1154_v63, %v1154_v63  ;;  %1483 = vst [vmem:[#allocation6 + $0x10] sm:$0xff] %v1154_v63  ;;  %v1077_v3 = vpop.f32.mrf.mxu2  ;;  %v1090_v4 = vpop.f32.mrf.mxu3 }
 0x14a   :  { %1454 = vmatmul.bf16.vlgmr.msrb.gmra.mxu2 %v1158_v0 }
 0x154   :  { %v1114_v6 = vpop.f32.mrf.mxu1 }
 0x155   :  { %v1101_v5 = vpop.f32.mrf.mxu0 }
 0x156   :  { %v1102_v9 = vadd.f32 %v1101_v5, %v291_v7 }
 0x158   :  { %v1115_v12 = vadd.f32 %v1114_v6, %v1102_v9 }
 0x15c   :  { %v1116_v11 = vpop.f32.mrf.mxu1 }
 0x15d   :  { %v1103_v10 = vpop.f32.mrf.mxu0 }
 0x160   :  { %v1127_v13 = vpop.f32.mrf.mxu2  ;;  %v1140_v14 = vpop.f32.mrf.mxu3 }
 0x161   :  { %v1128_v15 = vadd.f32 %v1127_v13, %v1115_v12 }
 0x163   :  { %v1141_v16 = vadd.f32 %v1140_v14, %v1128_v15 }
 0x165   :  { %vm1147_vm9 = vcmp.ge.f32.partialorder %v1141_v16, 0.0  ;;  %v1151_v17 = vmul.f32 0.2, %v1141_v16 }
 0x167   :  { %v1155_v18 = vsel %vm1147_vm9, %v1141_v16, %v1151_v17 }
 0x168   :  { %v1159_v19 = vpack.c.bf16 %v1155_v18, %v1155_v18  ;;  %1484 = vst [vmem:[#allocation6 + $0x18] sm:$0xff] %v1155_v18  ;;  %v1129_v20 = vpop.f32.mrf.mxu2  ;;  %v1142_v21 = vpop.f32.mrf.mxu3 }
 0x169   :  { %1506 = dma.vmem_to_hbm [thread:$0]  %s1502_s16, 512, %s1504_s18, [#allocation7]  }
 0x16a   :  { %1467 = vmatmul.bf16.vlgmr.msrb.gmra.mxu3 %v1159_v19 }
 0x1a7   :  { %v1429_v22 = vpop.f32.mrf.mxu0 }
 0x1a8   :  { %v1430_v28 = vadd.f32 %v2328_v27, %v1429_v22 }
 0x1af   :  { %v1431_v23 = vpop.f32.mrf.mxu0 }
 0x1b7   :  { %v1442_v24 = vpop.f32.mrf.mxu1 }
 0x1b8   :  { %v1443_v29 = vadd.f32 %v1442_v24, %v1430_v28 }
 0x1bf   :  { %v1444_v8 = vpop.f32.mrf.mxu1 }
 0x1cd   :  { %v1455_v25 = vpop.f32.mrf.mxu2 }
 0x1ce   :  { %v1456_v30 = vadd.f32 %v1455_v25, %v1443_v29 }
 0x1d5   :  { %v1457_v26 = vpop.f32.mrf.mxu2 }
 0x1ed   :  { %v1468_v31 = vpop.f32.mrf.mxu3 }
 0x1ee   :  { %v1469_v32 = vadd.f32 %v1468_v31, %v1456_v30 }
 0x1f0   :  { %1474 = vrot.lane.b32.xlu0 %v1469_v32, %s2411_s19 }
 0x1f5   :  { %v1470_v33 = vpop.f32.mrf.mxu3 }
 0x262   :  { %v1475_v37 = vpop.permute.xlu0 %1474 }
 0x263   :  { %v1477_v38 = vmul.f32 %v1475_v37, %v1472_v34 }
 0x265   :  { %v1478_v39 = vadd.f32 %v1477_v38, %v1469_v32 }
 0x267   :  { %1480 = vst.msk [vmem:[#allocation5] sm:$0xff] %vm1479_vm10, %v1478_v39 }
 0x268   :  { %1495 = dma.vmem_to_hbm [thread:$0]  %s1491_s0, 128, %s1493_s9, [#allocation4]  }
 0x269   :  { %2403 = dma.done.wait [#allocation4], 128  }
 0x26a   :  { %2404 = vsyncadd [#allocation4], 4294967168 }
 0x26b   :  { %2405 = dma.done.wait [#allocation7], 512  }
 0x26c   :  { %2406 = vsyncadd [#allocation7], 4294966784 }
 0x26d   :  { %1515 = vsyncpa [#allocation3], 1 }
 0x26e   :  { %1516 = vsyncpa [#allocation4], 1 }
 0x26f   :  { %1517 = vsyncpa [#allocation7], 1 }

</bundles_post_ra>
